<compile_context>
chip_gen: v7x
topology: tpu7x:2x2x1
jax: 0.10.0
libtpu: 0.0.40
codegen_flags: <defaults>
</compile_context>

<pallas_src>
import functools
import math

import jax
import jax.numpy as jnp
from jax.experimental import pallas as pl
from jax.experimental.pallas import tpu as pltpu


# ----------------------------------------------------------------------------
# Pallas kernel: one grid step = (one batch group of `channel` rows) x (one head).
#   x_ref : (C, L, D)    f32   rows of this batch group
#   w_ref : (1, D, 2E)   bf16  fused per-head [Wq_h | Wk_h]
#   b_ref : (1, 1, 2E)   f32   fused per-head [bq_h | bk_h]
#   o_ref : (1, 1, L, L) f32   channel-mean softmax attention map for (group, head)
# ----------------------------------------------------------------------------
def _head_scores_kernel(x_ref, w_ref, b_ref, o_ref, *, channel, head_dim):
    c, seq_len, d_model = x_ref.shape

    # Single 2-D MXU matmul for the fused Q/K projection (bf16 in, f32 acc).
    x2 = x_ref[...].reshape(c * seq_len, d_model).astype(jnp.bfloat16)
    qk = jnp.dot(x2, w_ref[0], preferred_element_type=jnp.float32) + b_ref[0]

    q = qk[:, :head_dim].reshape(c, seq_len, head_dim).astype(jnp.bfloat16)
    k = qk[:, head_dim:].reshape(c, seq_len, head_dim).astype(jnp.bfloat16)

    # One batched score matmul over all channel rows of the group.
    s = jnp.einsum("cle,cme->clm", q, k,
                   preferred_element_type=jnp.float32) * (1.0 / math.sqrt(head_dim))

    # One numerically-stable softmax; 1/channel of the channel mean is folded
    # into the (EUP) approximate reciprocal argument.
    s = s - jnp.max(s, axis=-1, keepdims=True)
    p = jnp.exp(s)
    denom = jnp.sum(p, axis=-1, keepdims=True) * float(channel)
    p = p * pl.reciprocal(denom, approx=True)

    # Channel mean via a single cross-row reduce; one dense store of the block.
    # (Lane-dense (L*L) flattening skipped on purpose: it would need a sublane->lane
    #  relayout in-kernel; the map is intrinsically patch-sized.)
    o_ref[0, 0] = jnp.sum(p, axis=0)


def attention_scores(x, w_qk_heads, b_qk_heads, *, channel, n_heads, head_dim):
    """x: (B*C, L, D), channel-minor row order.

    Returns the channel-mean of per-row softmax attention scores:
    (B, n_heads, L, L), float32.
    """
    bc, seq_len, d_model = x.shape
    assert bc % channel == 0, (bc, channel)
    b = bc // channel

    kernel = functools.partial(_head_scores_kernel, channel=channel,
                               head_dim=head_dim)

    return pl.pallas_call(
        kernel,
        out_shape=jax.ShapeDtypeStruct((b, n_heads, seq_len, seq_len),
                                       jnp.float32),
        grid=(b, n_heads),
        in_specs=[
            # x block depends only on the group -> unchanged across the (minor)
            # head axis, so no redundant re-fetch between consecutive steps.
            pl.BlockSpec((channel, seq_len, d_model), lambda g, h: (g, 0, 0)),
            pl.BlockSpec((1, d_model, 2 * head_dim), lambda g, h: (h, 0, 0)),
            pl.BlockSpec((1, 1, 2 * head_dim), lambda g, h: (h, 0, 0)),
        ],
        out_specs=pl.BlockSpec((1, 1, seq_len, seq_len),
                               lambda g, h: (g, h, 0, 0)),
        compiler_params=pltpu.CompilerParams(
            dimension_semantics=("parallel", "parallel"),
            vmem_limit_bytes=32 * 1024 * 1024),
    )(x, w_qk_heads, b_qk_heads)


# ----------------------------------------------------------------------------
# One attention layer (DAC_structure semantics): per-branch channel-mean softmax
# attention maps from the Pallas kernel, then a single broadcast+reshape upsample.
# ----------------------------------------------------------------------------
def attn_layer_forward(params, x_patch_size, x_patch_num, patch_index,
                       *, patch_size_list, win_size, channel, n_heads):
    patch_size = patch_size_list[patch_index]
    head_dim = params["head_dim"]

    series_ps = attention_scores(
        x_patch_size, params["w_qk_heads"], params["b_qk_heads"],
        channel=channel, n_heads=n_heads, head_dim=head_dim)   # (B, H, l1, l1)
    series_pn = attention_scores(
        x_patch_num, params["w_qk_heads"], params["b_qk_heads"],
        channel=channel, n_heads=n_heads, head_dim=head_dim)   # (B, H, l2, l2)

    b, h, l1, _ = series_ps.shape
    l2 = series_pn.shape[-1]
    rep = win_size // patch_size

    # Patch-wise branch: each element repeated patch_size x patch_size
    # (== chained jnp.repeat, done as one broadcast + reshape).
    patch_wise = jnp.broadcast_to(
        series_ps[:, :, :, None, :, None],
        (b, h, l1, patch_size, l1, patch_size),
    ).reshape(b, h, win_size, win_size)

    # In-patch branch: whole map tiled rep x rep (== jnp.tile, one broadcast+reshape).
    in_patch = jnp.broadcast_to(
        series_pn[:, :, None, :, None, :],
        (b, h, rep, l2, rep, l2),
    ).reshape(b, h, win_size, win_size)

    return patch_wise, in_patch


# ----------------------------------------------------------------------------
# Encoder: exactly the reference loop — every layer sees the same inputs, only the
# final layer's (patch_wise, in_patch) is returned.  (If a caller only needs the
# final output it can pass layer_params_list[-1:] to skip the dead work.)
# ----------------------------------------------------------------------------
def encoder_forward(layer_params_list, x_patch_size, x_patch_num, patch_index,
                    *, patch_size_list, win_size, channel, n_heads):
    patch_wise = in_patch = None
    for params in layer_params_list:
        patch_wise, in_patch = attn_layer_forward(
            params, x_patch_size, x_patch_num, patch_index,
            patch_size_list=patch_size_list, win_size=win_size,
            channel=channel, n_heads=n_heads)
    return patch_wise, in_patch


# ----------------------------------------------------------------------------
# Deterministic parameter construction (synthetic — no checkpoint load).
# The per-head fused [Wq_h | Wk_h] layout is built ONCE here (bf16 for the MXU).
# ----------------------------------------------------------------------------
def init_layer_params(key, d_model, n_heads):
    d_keys = d_model // n_heads
    he = d_keys * n_heads
    k1, k2, k3, k4 = jax.random.split(key, 4)
    bound = 1.0 / math.sqrt(d_model)
    wq = jax.random.uniform(k1, (d_model, he), jnp.float32, -bound, bound)
    bq = jax.random.uniform(k2, (he,), jnp.float32, -bound, bound)
    wk = jax.random.uniform(k3, (d_model, he), jnp.float32, -bound, bound)
    bk = jax.random.uniform(k4, (he,), jnp.float32, -bound, bound)

    # Head-major feature order (matches nn.Linear + .view(B, L, H, E)).
    wq_h = wq.reshape(d_model, n_heads, d_keys).transpose(1, 0, 2)   # (H, D, E)
    wk_h = wk.reshape(d_model, n_heads, d_keys).transpose(1, 0, 2)   # (H, D, E)
    w_qk_heads = jnp.concatenate([wq_h, wk_h], axis=-1).astype(jnp.bfloat16)
    b_qk_heads = jnp.concatenate([bq.reshape(n_heads, 1, d_keys),
                                  bk.reshape(n_heads, 1, d_keys)], axis=-1)

    return {"w_qk_heads": w_qk_heads,      # (H, D, 2E) bf16
            "b_qk_heads": b_qk_heads,      # (H, 1, 2E) f32
            "head_dim": d_keys}


if __name__ == "__main__":
    # Small, shape-consistent configuration.
    B = 2            # batch
    C = 4            # channels (features); inputs are flattened to (B*C, L, D)
    WIN = 16         # window size
    PATCH_LIST = [4]
    PATCH_INDEX = 0
    PATCH = PATCH_LIST[PATCH_INDEX]
    PATCH_NUM = WIN // PATCH
    D_MODEL = 32
    N_HEADS = 2
    N_LAYERS = 2

    key = jax.random.PRNGKey(0)
    kx1, kx2, kp = jax.random.split(key, 3)

    x_patch_size = jax.random.normal(kx1, (B * C, PATCH_NUM, D_MODEL),
                                     jnp.float32)
    x_patch_num = jax.random.normal(kx2, (B * C, PATCH, D_MODEL), jnp.float32)

    layer_keys = jax.random.split(kp, N_LAYERS)
    layer_params = [init_layer_params(k, D_MODEL, N_HEADS) for k in layer_keys]

    patch_wise, in_patch = encoder_forward(
        layer_params, x_patch_size, x_patch_num, PATCH_INDEX,
        patch_size_list=PATCH_LIST, win_size=WIN, channel=C, n_heads=N_HEADS)

    jax.block_until_ready((patch_wise, in_patch))

    assert patch_wise.shape == (B, N_HEADS, WIN, WIN), patch_wise.shape
    assert in_patch.shape == (B, N_HEADS, WIN, WIN), in_patch.shape
    assert bool(jnp.all(jnp.isfinite(patch_wise)))
    assert bool(jnp.all(jnp.isfinite(in_patch)))

    print("KERNEL_OK")
</pallas_src>

<mosaic_0001>
module attributes {stable_mosaic.version = 11 : i64} {
  func.func @_head_scores_kernel(%arg0: i32, %arg1: i32, %arg2: memref<4x4x32xf32, #tpu.memory_space<vmem>>, %arg3: memref<1x32x32xbf16, #tpu.memory_space<vmem>>, %arg4: memref<1x1x32xf32, #tpu.memory_space<vmem>>, %arg5: memref<1x1x4x4xf32, #tpu.memory_space<vmem>>) attributes {dimension_semantics = [#tpu.dimension_semantics<parallel>, #tpu.dimension_semantics<parallel>], iteration_bounds = array<i64: 2, 2>, scalar_prefetch = 0 : i64, scratch_operands = 0 : i64, tpu.core_type = #tpu.core_type<tc>, window_params = [{transform_indices = @transform_0, window_bounds = array<i64: 4, 4, 32>}, {transform_indices = @transform_1, window_bounds = array<i64: 1, 32, 32>}, {transform_indices = @transform_2, window_bounds = array<i64: 1, 1, 32>}, {transform_indices = @transform_3, window_bounds = array<i64: 1, 1, 4, 4>}]} {
    %c0 = arith.constant 0 : index
    %c0_0 = arith.constant 0 : index
    %c0_1 = arith.constant 0 : index
    %0 = vector.load %arg2[%c0, %c0_0, %c0_1] : memref<4x4x32xf32, #tpu.memory_space<vmem>>, vector<4x4x32xf32>
    %1 = vector.shape_cast %0 : vector<4x4x32xf32> to vector<16x32xf32>
    %2 = arith.truncf %1 : vector<16x32xf32> to vector<16x32xbf16>
    %c0_2 = arith.constant 0 : index
    %c0_3 = arith.constant 0 : index
    %c0_4 = arith.constant 0 : index
    %3 = vector.load %arg3[%c0_2, %c0_3, %c0_4] : memref<1x32x32xbf16, #tpu.memory_space<vmem>>, vector<1x32x32xbf16>
    %4 = vector.shape_cast %3 : vector<1x32x32xbf16> to vector<32x32xbf16>
    %cst = arith.constant dense<0.000000e+00> : vector<16x32xf32>
    %5 = tpu.matmul %2, %4, %cst {dimension_numbers = #tpu.dot_dimension_numbers<[1], [0], [0], [1], [0, 0, 1, 1], [], []>} : vector<16x32xbf16>, vector<32x32xbf16>, vector<16x32xf32> -> vector<16x32xf32>
    %c0_5 = arith.constant 0 : index
    %c0_6 = arith.constant 0 : index
    %c0_7 = arith.constant 0 : index
    %6 = vector.load %arg4[%c0_5, %c0_6, %c0_7] : memref<1x1x32xf32, #tpu.memory_space<vmem>>, vector<1x1x32xf32>
    %7 = vector.shape_cast %6 : vector<1x1x32xf32> to vector<1x32xf32>
    %8 = vector.broadcast %7 : vector<1x32xf32> to vector<16x32xf32>
    %9 = arith.addf %5, %8 : vector<16x32xf32>
    %10 = vector.extract_strided_slice %9 {offsets = [0, 0], sizes = [16, 16], strides = [1, 1]} : vector<16x32xf32> to vector<16x16xf32>
    %11 = vector.shape_cast %10 : vector<16x16xf32> to vector<4x4x16xf32>
    %12 = arith.truncf %11 : vector<4x4x16xf32> to vector<4x4x16xbf16>
    %13 = vector.extract_strided_slice %9 {offsets = [0, 16], sizes = [16, 16], strides = [1, 1]} : vector<16x32xf32> to vector<16x16xf32>
    %14 = vector.shape_cast %13 : vector<16x16xf32> to vector<4x4x16xf32>
    %15 = arith.truncf %14 : vector<4x4x16xf32> to vector<4x4x16xbf16>
    "tpu.trace_start"() <{level = 10 : i32, message = "cle,cme->clm"}> : () -> ()
    %cst_8 = arith.constant dense<0.000000e+00> : vector<4x4x4xf32>
    %16 = tpu.matmul %12, %15, %cst_8 {dimension_numbers = #tpu.dot_dimension_numbers<[2], [2], [1], [1], [0, 0, 0, 1, 1, 1], [0], [0]>} : vector<4x4x16xbf16>, vector<4x4x16xbf16>, vector<4x4x4xf32> -> vector<4x4x4xf32>
    "tpu.trace_stop"() : () -> ()
    %cst_9 = arith.constant 2.500000e-01 : f32
    %17 = vector.broadcast %cst_9 : f32 to vector<4x4x4xf32>
    %18 = arith.mulf %16, %17 : vector<4x4x4xf32>
    %cst_10 = arith.constant dense<0xFF800000> : vector<4x4xf32>
    %19 = vector.multi_reduction <maximumf>, %18, %cst_10 [2] : vector<4x4x4xf32> to vector<4x4xf32>
    %20 = vector.shape_cast %19 : vector<4x4xf32> to vector<4x4x1xf32>
    %21 = vector.broadcast %20 : vector<4x4x1xf32> to vector<4x4x4xf32>
    %22 = arith.subf %18, %21 : vector<4x4x4xf32>
    %23 = math.exp %22 : vector<4x4x4xf32>
    %cst_11 = arith.constant dense<0.000000e+00> : vector<4x4xf32>
    %24 = vector.multi_reduction <add>, %23, %cst_11 [2] : vector<4x4x4xf32> to vector<4x4xf32>
    %25 = vector.shape_cast %24 : vector<4x4xf32> to vector<4x4x1xf32>
    %cst_12 = arith.constant 4.000000e+00 : f32
    %26 = vector.broadcast %cst_12 : f32 to vector<4x4x1xf32>
    %27 = arith.mulf %25, %26 : vector<4x4x1xf32>
    %28 = tpu.reciprocal %27 {approx = true} : vector<4x4x1xf32> -> vector<4x4x1xf32>
    %29 = vector.broadcast %28 : vector<4x4x1xf32> to vector<4x4x4xf32>
    %30 = arith.mulf %23, %29 : vector<4x4x4xf32>
    %cst_13 = arith.constant dense<0.000000e+00> : vector<4x4xf32>
    %31 = vector.multi_reduction <add>, %30, %cst_13 [0] : vector<4x4x4xf32> to vector<4x4xf32>
    %c0_14 = arith.constant 0 : index
    %c0_15 = arith.constant 0 : index
    %c0_16 = arith.constant 0 : index
    %c0_17 = arith.constant 0 : index
    %32 = vector.load %arg5[%c0_14, %c0_15, %c0_16, %c0_17] : memref<1x1x4x4xf32, #tpu.memory_space<vmem>>, vector<1x1x4x4xf32>
    %33 = vector.shape_cast %32 : vector<1x1x4x4xf32> to vector<4x4xf32>
    %34 = vector.shape_cast %31 : vector<4x4xf32> to vector<1x1x4x4xf32>
    tpu.vector_store %arg5[%c0_14, %c0_15, %c0_16, %c0_17], %34 {strides = array<i32>} : memref<1x1x4x4xf32, #tpu.memory_space<vmem>>, vector<1x1x4x4xf32>,
    return
  }
  func.func @transform_0(%arg0: i32, %arg1: i32) -> (i32, i32, i32) {
    %c0_i32 = arith.constant 0 : i32
    %c0_i32_0 = arith.constant 0 : i32
    %c0_i32_1 = arith.constant 0 : i32
    return %arg0, %c0_i32, %c0_i32_0 : i32, i32, i32
  }
  func.func @transform_1(%arg0: i32, %arg1: i32) -> (i32, i32, i32) {
    %c0_i32 = arith.constant 0 : i32
    %c0_i32_0 = arith.constant 0 : i32
    %c0_i32_1 = arith.constant 0 : i32
    return %arg1, %c0_i32, %c0_i32_0 : i32, i32, i32
  }
  func.func @transform_2(%arg0: i32, %arg1: i32) -> (i32, i32, i32) {
    %c0_i32 = arith.constant 0 : i32
    %c0_i32_0 = arith.constant 0 : i32
    %c0_i32_1 = arith.constant 0 : i32
    return %arg1, %c0_i32, %c0_i32_0 : i32, i32, i32
  }
  func.func @transform_3(%arg0: i32, %arg1: i32) -> (i32, i32, i32, i32) {
    %c0_i32 = arith.constant 0 : i32
    %c0_i32_0 = arith.constant 0 : i32
    %c0_i32_1 = arith.constant 0 : i32
    return %arg0, %arg1, %c0_i32, %c0_i32_0 : i32, i32, i32, i32
  }
}

</mosaic_0001>

<bundles_post_ra>
// kernel: tpu_custom_call.1
= control target key start
LH: loop header
LB: loop body
LE: loop exit
PB: predicated region body
PF: predicated region fallthrough
CT: control target
= control target key end

     0   :  { %s1582_s0 = inlined_call_operand.hbm [shape: f32[8,4,32], index: 0, kind: input, shape index: {}]   ;;  %s1583_s1 = inlined_call_operand.hbm [shape: bf16[2,32,32], index: 1, kind: input, shape index: {}]   ;;  %s1584_s2 = inlined_call_operand.vmem [shape: f32[2,1,32], index: 2, kind: input, shape index: {}]   ;;  %s1585_s3 = inlined_call_operand.hbm [shape: f32[2,2,4,4], index: 3, kind: output, shape index: {}]  }
   0x1   :  { %1598 = sst [smem:[#allocation15_spill]] %s1582_s0 }
   0x2   :  { %1599 = sst [smem:[#allocation16_spill]] %s1583_s1 }
   0x3   :  { %1600 = sst [smem:[#allocation17_spill]] %s1585_s3 }
   0x4   :  { %8 = vsyncpa [#allocation3], 0 }
   0x5   :  { %10 = vsyncpa [#allocation3 + $0x1], 0 }
   0x6   :  { %11 = vsyncpa [#allocation6], 0 }
   0x7   :  { %13 = vsyncpa [#allocation6 + $0x1], 0 }
   0x8   :  { %14 = vsyncpa [#allocation4], 0 }
   0x9   :  { %16 = vsyncpa [#allocation4 + $0x1], 0  ;;  %s1207_s12 = smov 0   ;;  %s1209_s13 = smov 0  }
   0xa   :  { %s1211_s14 = smov 0   ;;  %s1213_s15 = smov 0  }
   0xb   :  { %s1215_s16 = smov 0   ;;  %s1217_s17 = smov 0  }
   0xc   :  { %s1219_s18 = smov 0   ;;  %s1221_s19 = smov 0  }
   0xd   :  { %s1223_s20 = smov 0   ;;  %s1225_s21 = smov 0  }
   0xe   :  { %s1227_s22 = smov 0   ;;  %s1229_s23 = smov 0  }
   0xf   :  { %s1231_s24 = smov 0   ;;  %s1233_s25 = smov 0  }
  0x10 LB: > { %1601 = sst [smem:[#allocation11_spill]] %s1169_s23  ;;  %s739_s26 = sadd.s32 4294967295, %s1177_s25   ;;  %s1177_s25 = sphi %s1233_s25, %s22_s25   ;;  %s1173_s24 = sphi %s1231_s24, %s1632_s24   ;;  %s1169_s23 = sphi %s1229_s23, %s1643_s23   ;;  %s1165_s22 = sphi %s1227_s22, %s1630_s22   ;;  %s1161_s21 = sphi %s1225_s21, %s1629_s21   ;;  %s1157_s20 = sphi %s1223_s20, %s1642_s20   ;;  %s1153_s19 = sphi %s1221_s19, %s1641_s19   ;;  %s1149_s18 = sphi %s1219_s18, %s1640_s18   ;;  %s1145_s17 = sphi %s1217_s17, %s1639_s17   ;;  %s1141_s16 = sphi %s1215_s16, %s1638_s16   ;;  %s1137_s15 = sphi %s1213_s15, %s1637_s15   ;;  %s1133_s14 = sphi %s1211_s14, %s1636_s14   ;;  %s1129_s13 = sphi %s1209_s13, %s1635_s13   ;;  %s1125_s12 = sphi %s1207_s12, %s1634_s12  }
  0x11   : > { %1602 = sst [smem:[#allocation12_spill]] %s1173_s24  ;;  %p48_p0 = scmp.ne.s32.totalorder %s1157_s20, %s1153_s19 }
  0x12   : > { %p1587_p1 = scmp.eq.s32.totalorder %s1177_s25, 0  ;;  %p54_p2 = scmp.ne.s32.totalorder %s1153_s19, %s1149_s18 }
  0x13   : > { %p1284_p3 = scmp.eq.s32.totalorder %s739_s26, 0  ;;  %p1586_p6 = scmp.lt.s32.totalorder %s1177_s25, 4 }
  0x14   : > { %p50_p4 = por %p1587_p1, %p48_p0  ;;  %s158_s4 = sand.u32 1, %s1157_s20  }
  0x15   : > { %p1292_p5 = por %p1284_p3, %p54_p2  ;;  %s766_s5 = sshll.u32 %s1173_s24, 8 }
  0x16   : > { %s743_s6 = sshll.u32 %s158_s4, 4  ;;  %s1605_s0 = sld [smem:[#allocation15_spill]] }
  0x17   : > { %s1604_s30 = scalar_select %p1292_p5, 1, 0 }
  0x18   : > { %s162_s10 = scalar_lea.vmem [#allocation2], %s743_s6  ;;  %p1306_p7 = pnand %p1586_p6, %p50_p4 }
  0x19   : > { %s169_s11 = sshll.u32 %s162_s10, 4  ;;  %s1312_s28 = scalar_lea.sflag [#allocation3], %s158_s4  ;;  %s1310_s11 = int_to_ptr.vmem [resolvable:$true] %s169_s11 }
  0x1a   : > { %p969_p9 = pneg %p1306_p7 }
  0x1c   : > { %s1302_s9 = scalar_lea.hbm %s1605_s0, %s766_s5  ;;  %s972_s8 = scalar_lea.hbm %s1605_s0, 512 }
  0x1d   : > { %s967_s7 = scalar_lea.hbm %s1302_s9, 256  ;;  %p973_p12 = scmp.lt.u32.totalorder %s1302_s9, %s1605_s0 }
  0x1e   : > { %p968_p8 = scmp.ne.s32.totalorder %s1302_s9, %s967_s7  ;;  %p974_p13 = scmp.lt.u32.totalorder %s972_s8, %s967_s7 }
  0x1f   : > { %p976_p2 = scmp.lt.u32.totalorder %s967_s7, %s1302_s9 }
  0x20   : > { %p970_p10 = pnand %p969_p9, %p968_p8  ;;  %p975_p0 = por %p974_p13, %p973_p12 }
  0x22   : > { %p971_p11 = pneg %p970_p10  ;;  %p977_p4 = por %p976_p2, %p975_p0 }
  0x24   : > { %p978_p6 = pnand %p977_p4, %p971_p11 }
  0x26   : > { %981 = shalt.err (!%p978_p6)
}
  0x27   : > { %s982_s4 = scalar_lea.vmem %s1310_s11, 256  ;;  %s1179_s5 = smov [#allocation2]  }
  0x28   : > { %p983_p8 = scmp.ne.s32.totalorder %s1310_s11, %s982_s4  ;;  %s987_s6 = sshll.u32 %s1179_s5, 4  ;;  %s988_s6 = int_to_ptr.vmem [resolvable:$false] %s987_s6 }
  0x29   : > { %s989_s27 = scalar_lea.vmem %s988_s6, 512  ;;  %p990_p5 = scmp.lt.s32.totalorder %s1310_s11, %s988_s6 }
  0x2a   : > { %p985_p10 = pnand %p983_p8, %p969_p9  ;;  %p991_p12 = scmp.lt.s32.totalorder %s989_s27, %s982_s4 }
  0x2c   : > { %p986_p1 = pneg %p985_p10  ;;  %p992_p13 = por %p991_p12, %p990_p5 }
  0x2e   : > { %p993_p0 = pnand %p992_p13, %p986_p1 }
  0x30   : > { %996 = shalt.err (!%p993_p0)
}
  0x31   : > { %s1589_s7 = smov 64   ;;  %s1590_s8 = smov 4  }
  0x32   : > { %820 = dma.hbm_to_vmem [thread:$0]  (!%p1306_p7), %s1302_s9, 256, %s1310_s11, %s1312_s28, %s1589_s7, %s1589_s7, %s1590_s8  }
  0x33   : > { %p749_p1 = scmp.ge.s32.totalorder %s1177_s25, 1  ;;  %p204_p5 = scmp.lt.s32.totalorder %s1177_s25, 5 }
  0x34   : > { %p1347_p6 = scmp.eq.s32.totalorder %s739_s26, 3  ;;  %s740_s18 = sadd.s32 4294967294, %s1177_s25  }
  0x35   : > { %p1351_p9 = pnand %p749_p1, %p204_p5  ;;  %s31_s5 = sadd.s32 1, %s1169_s23 }
  0x36   : > { %p32_p7 = scmp.ge.s32.totalorder %s31_s5, 2  ;;  %s67_s28 = sadd.s32 1, %s1145_s17 }
  0x37   : > { %p74_p11 = scmp.ne.s32.totalorder %s1145_s17, %s1141_s16  ;;  %p80_p2 = scmp.ne.s32.totalorder %s1141_s16, %s1137_s15 }
  0x38   : > { %s1645_s5 = smov (%p32_p7, %s31_s5), 0  ;;  %s1610_s26 = sadd.s32 1, %s1173_s24 }
  0x39   : > { %1609 = sst [smem:[#allocation13_spill]] %s1645_s5  ;;  %s1647_s26 = smov (!%p32_p7, %s1610_s26), %s1173_s24 }
  0x3a   : > { %s64_s9 = ssub.s32 %s1169_s23, %s1645_s5  ;;  %s121_s11 = sadd.s32 1, %s1133_s14 }
  0x3b   : > { %p36_p4 = scmp.ge.s32.totalorder %s1647_s26, 2  ;;  %p65_p8 = scmp.eq.s32.totalorder %s64_s9, 0 }
  0x3c   : > { %p1372_p10 = por %p80_p2, %p1284_p3  ;;  %p131_p12 = scmp.ne.s32.totalorder %s1133_s14, %s1129_s13 }
  0x3d   : > { %s1649_s26 = smov (%p36_p4, %s1647_s26), 0  ;;  %p137_p1 = scmp.ne.s32.totalorder %s1129_s13, %s1125_s12 }
  0x3e   : > { %s1611_s15 = scalar_select %p1372_p10, 1, 0 }
  0x3f   : > { %1612 = sst [smem:[#allocation14_spill]] %s1649_s26  ;;  %s38_s27 = ssub.s32 %s1173_s24, %s1649_s26 }
  0x40   : > { %s1381_s6 = scalar_select %p65_p8, %s1145_s17, %s67_s28  }
  0x41   : > { %p1387_p13 = por %p1347_p6, %p131_p12  ;;  %p39_p0 = scmp.eq.s32.totalorder %s38_s27, 0 }
  0x42   : > { %s118_s29 = sor.u32 %s64_s9, %s38_s27  ;;  %s1614_s8 = sadd.s32 1, %s1157_s20 }
  0x43   : > { %s1613_s7 = scalar_select %p1387_p13, 1, 0 }
  0x44   : > { %p119_p3 = scmp.eq.s32.totalorder %s118_s29, 0  ;;  %p138_p5 = scmp.eq.s32.totalorder %s740_s18, 3 }
  0x45   : > { %s1396_s0 = scalar_select %p39_p0, %s1157_s20, %s1614_s8  }
  0x46   : > { %s1399_s5 = scalar_select %p119_p3, %s1133_s14, %s121_s11  }
  0x47   : > { %s179_s3 = sand.u32 1, %s1145_s17   ;;  %p1615_p7 = scmp.eq.s32.totalorder %s1177_s25, 0 }
  0x48   : > { %s746_s10 = sshll.u32 %s179_s3, 4  ;;  %p1407_p6 = por %p138_p5, %p137_p1 }
  0x49   : > { %p76_p2 = por %p74_p11, %p1615_p7  ;;  %s767_s26 = sshll.u32 %s1169_s23, 8 }
  0x4a   : > { %s1616_s28 = scalar_select %p1407_p6, 1, 0 }
  0x4b   : > { %s183_s24 = scalar_lea.vmem [#allocation5], %s746_s10  ;;  %s1617_s1 = sld [smem:[#allocation16_spill]] }
  0x4c   : > { %s190_s9 = sshll.u32 %s183_s24, 4  ;;  %p1618_p11 = scmp.lt.s32.totalorder %s1177_s25, 4  ;;  %s1417_s9 = int_to_ptr.vmem [resolvable:$true] %s190_s9 }
  0x4d   : > { %s1425_s11 = scalar_lea.sflag [#allocation6], %s179_s3 }
  0x4e   : > { %p1421_p4 = pnand %p1618_p11, %p76_p2 }
  0x50   : > { %p999_p12 = pneg %p1421_p4 }
  0x51   : > { %s1415_s8 = scalar_lea.hbm %s1617_s1, %s767_s26  ;;  %s1002_s27 = scalar_lea.hbm %s1617_s1, 512 }
  0x52   : > { %s997_s24 = scalar_lea.hbm %s1415_s8, 256  ;;  %p1003_p1 = scmp.lt.u32.totalorder %s1415_s8, %s1617_s1 }
  0x53   : > { %p998_p8 = scmp.ne.s32.totalorder %s1415_s8, %s997_s24  ;;  %p1004_p5 = scmp.lt.u32.totalorder %s1002_s27, %s997_s24 }
  0x54   : > { %p1006_p2 = scmp.lt.u32.totalorder %s997_s24, %s1415_s8 }
  0x55   : > { %p1000_p0 = pnand %p999_p12, %p998_p8  ;;  %p1005_p7 = por %p1004_p5, %p1003_p1 }
  0x57   : > { %p1001_p3 = pneg %p1000_p0  ;;  %p1007_p11 = por %p1006_p2, %p1005_p7 }
  0x59   : > { %p1008_p6 = pnand %p1007_p11, %p1001_p3 }
  0x5b   : > { %1011 = shalt.err (!%p1008_p6)
}
  0x5c   : > { %s1012_s3 = scalar_lea.vmem %s1417_s9, 256  ;;  %s1182_s26 = smov [#allocation5]  }
  0x5d   : > { %p1013_p8 = scmp.ne.s32.totalorder %s1417_s9, %s1012_s3  ;;  %s1017_s10 = sshll.u32 %s1182_s26, 4  ;;  %s1018_s10 = int_to_ptr.vmem [resolvable:$false] %s1017_s10 }
  0x5e   : > { %s1019_s23 = scalar_lea.vmem %s1018_s10, 512  ;;  %p1020_p10 = scmp.lt.s32.totalorder %s1417_s9, %s1018_s10 }
  0x5f   : > { %p1015_p0 = pnand %p1013_p8, %p999_p12  ;;  %p1021_p1 = scmp.lt.s32.totalorder %s1019_s23, %s1012_s3 }
  0x61   : > { %p1016_p13 = pneg %p1015_p0  ;;  %p1022_p5 = por %p1021_p1, %p1020_p10 }
  0x63   : > { %p1023_p7 = pnand %p1022_p5, %p1016_p13 }
  0x65   : > { %1026 = shalt.err (!%p1023_p7)
}
  0x66   : > { %s1620_s24 = smov 4   ;;  %s1621_s27 = smov 64  }
  0x67   : > { %823 = dma.hbm_to_vmem [thread:$0]  (!%p1421_p4), %s1415_s8, 256, %s1417_s9, %s1425_s11, %s1621_s27, %s1621_s27, %s1620_s24  }
  0x68   : > { %208 = sbr.rel (%p1351_p9) target bundleno = 1024 (0x400), region = 32  ;;  %s210_s29 = sand.u32 (!%p1351_p9), 1, %s1153_s19  }
  0x69   : > { %s750_s26 = sshll.u32 (!%p1351_p9), %s210_s29, 4  ;;  %s211_s3 = scalar_lea.sflag (!%p1351_p9), [#allocation3], %s210_s29 }
  0x6a   : > { %s214_s10 = scalar_lea.vmem (!%p1351_p9), [#allocation2], %s750_s26  ;;  %p1622_p10 = scmp.ne.s32.totalorder (!%p1351_p9), %s1604_s30, 0 }
  0x6f   : > { %1112 = dma.done.wait (%p1622_p10), %s211_s3, 256  }
  0x70   : > { %1114 = vsyncadd (%p1622_p10), %s211_s3, 4294967040  ;;  %s219_s18 = sand.u32 1, %s1141_s16   ;;  %p1623_p13 = scmp.ne.s32.totalorder %s1611_s15, 0 }
  0x71   : > { %s751_s23 = sshll.u32 %s219_s18, 4  ;;  %s220_s1 = scalar_lea.sflag [#allocation6], %s219_s18 }
  0x72   : > { %s223_s9 = scalar_lea.vmem [#allocation5], %s751_s23 }
  0x73   : > { %1116 = dma.done.wait (%p1623_p13), %s220_s1, 256  }
  0x74   : > { %1118 = vsyncadd (%p1623_p13), %s220_s1, 4294967040  ;;  %v1183_v0 = vmov 0.0   ;;  %vm1184_vm0 = vmmov 0   ;;  %v947_v1 = vld [vmem:[%s223_s9] sm:$0xff]   ;;  %v948_v2 = vld [vmem:[%s223_s9 + $0x8] sm:$0xff]   ;;  %vm295_vm1 = vcmask 261120  }
  0x75   : > { %779 = vmatprep.subr.bf16.mxu0 %v1183_v0  ;;  %783 = vmatprep.mubr.msk.bf16.mxu0 %vm1184_vm0, %v1183_v0  ;;  %v949_v3 = vld [vmem:[%s214_s10] sm:$0xff]   ;;  %v950_v4 = vld [vmem:[%s214_s10 + $0x8] sm:$0xff]   ;;  %p255_p9 = scmp.lt.s32.totalorder %s1161_s21, 1  ;;  %s1185_s8 = smov 112   ;;  %vm353_vm2 = vcmask 130048   ;;  %vm551_vm3 = vcmask 27648  }
  0x76   : > { %787 = vmatprep.subr.bf16.mxu1 %v1183_v0  ;;  %789 = vmatprep.mubr.msk.bf16.mxu1 %vm1184_vm0, %v1183_v0  ;;  %v271_v5 = vpack.c.bf16 %v950_v4, %v949_v3  ;;  %s251_s11 = sand.u32 1, %s1129_s13   ;;  %s762_s27 = sshll.u32 %s1165_s22, 1 }
  0x77   : > { %780 = vmatpush3.bf16.msra.mxu0 %v947_v1  ;;  %s256_s1 = scalar_select %p255_p9, %s1161_s21, 1 }
  0x78   : > { %781 = vmatprep.subr.bf16.mxu0 %v1183_v0  ;;  %s752_s24 = sshll.u32 %s251_s11, 2  ;;  %s620_s29 = sadd.s32 %s1161_s21, %s762_s27 }
  0x79   : > { %s257_s15 = scalar_lea.vmem %s1584_s2, %s256_s1  ;;  %s763_s26 = sshll.u32 %s620_s29, 6 }
  0x7a   : > { %v753_v6 = vld [vmem:[%s257_s15] ss:$0 sm:$0xff]  ;;  %s253_s3 = scalar_lea.vmem [#allocation7], %s752_s24  ;;  %s1624_s23 = sld [smem:[#allocation17_spill]] }
  0x7b   : > { %782 = vmatpush3.bf16.msra.mxu0 %v948_v2  ;;  %s624_s10 = sshll.u32 %s253_s3, 4  ;;  %s609_s21 = scalar_lea.sflag [#allocation4], %s251_s11  ;;  %s1506_s10 = int_to_ptr.vmem [resolvable:$true] %s624_s10 }
  0x7c   : > { %793 = vmatprep.subr.bf16.mxu0 %v1183_v0  ;;  %s1027_s30 = scalar_lea.vmem %s1506_s10, 64  ;;  %p1626_p4 = scmp.ne.s32.totalorder %s1613_s7, 0 }
  0x7d   : > { %p1028_p6 = scmp.ne.s32.totalorder %s1506_s10, %s1027_s30  ;;  %s1186_s4 = smov [#allocation7]  }
  0x7e   : > { %784 = vmatmul.mubr.msk.bf16.vlgmr.msra.gmra.mrb[0].mxu0 %vm295_vm1, %v271_v5  ;;  %s1031_s15 = sshll.u32 %s1186_s4, 4  ;;  %s1032_s15 = int_to_ptr.vmem [resolvable:$false] %s1031_s15 }
  0x7f   : > { %795 = vmatprep.mubr.msk.bf16.mxu0 %vm1184_vm0, %v1183_v0  ;;  %p1029_p12 = pnand %p1028_p6, %p1626_p4  ;;  %p1034_p2 = scmp.lt.s32.totalorder %s1506_s10, %s1032_s15 }
  0x80   : > { %s1625_s9 = smov %s1624_s23  ;;  %s1504_s1 = scalar_lea.hbm %s1624_s23, %s763_s26 }
  0x81   : > { %p1030_p3 = pneg %p1029_p12 }
 0x151   : > { %v333_v7 = vpop.f32.mrb[0].mxu0 }
 0x152   : > { %v334_v8 = vadd.f32 %v753_v6, %v333_v7  ;;  %v785_v9 = vpop.f32.mrb[1].mxu0 }
 0x153   : > { %v336_v10 = vpop.f32.mrb[2].mxu0 }
 0x154   : > { %v342_v11 = vcombine.high %v334_v8, %v334_v8  ;;  %v337_v12 = vadd.f32 %v753_v6, %v336_v10  ;;  %v786_v13 = vpop.f32.mrb[3].mxu0  ;;  %v346_v14 = vpack.c.bf16 %v334_v8, %v334_v8 }
 0x156   : > { %v343_v15 = vcombine.high %v337_v12, %v337_v12  ;;  %351 = vrot.lane.b32.xlu0 %v346_v14, %s1185_s8  ;;  %v348_v16 = vpack.c.bf16 %v337_v12, %v337_v12  ;;  %v347_v17 = vpack.c.bf16 %v342_v11, %v342_v11 }
 0x158   : > { %450 = vrot.lane.b32.xlu1 %v348_v16, %s1185_s8  ;;  %v349_v18 = vpack.c.bf16 %v343_v15, %v343_v15 }
 0x15a   : > { %401 = vrot.lane.b32.xlu0 %v347_v17, %s1185_s8 }
 0x15c   : > { %499 = vrot.lane.b32.xlu1 %v349_v18, %s1185_s8  ;;  %s1033_s8 = scalar_lea.vmem %s1032_s15, 128 }
 0x15d   : > { %p1035_p11 = scmp.lt.s32.totalorder %s1033_s8, %s1027_s30 }
 0x15f   : > { %p1036_p8 = por %p1035_p11, %p1034_p2 }
 0x161   : > { %p1037_p0 = pnand %p1036_p8, %p1030_p3 }
 0x1c8   : > { %v352_v19 = vpop.permute.xlu0 %351 }
 0x1c9   : > { %v358_v20 = vsel %vm353_vm2, %v352_v19, 0 }
 0x1ca   : > { %788 = vmatpush3.bf16.xpose.msra.mxu1 %v358_v20  ;;  %v451_v21 = vpop.permute.xlu1 %450 }
 0x1cb   : > { %799 = vmatprep.subr.bf16.mxu1 %v1183_v0  ;;  %v456_v24 = vsel %vm353_vm2, %v451_v21, 0 }
 0x1cc   : > { %v402_v22 = vpop.permute.xlu0 %401 }
 0x1cd   : > { %v407_v23 = vsel %vm353_vm2, %v402_v22, 0 }
 0x1ce   : > { %794 = vmatpush3.bf16.xpose.msra.mxu0 %v407_v23  ;;  %v500_v25 = vpop.permute.xlu1 %499 }
 0x1cf   : > { %805 = vmatprep.subr.bf16.mxu0 %v1183_v0  ;;  %v505_v26 = vsel %vm353_vm2, %v500_v25, 0 }
 0x1d1   : > { %790 = vmatmul.mubr.msk.bf16.vlgmr.msra.gmra.mrb[0].mxu1 %vm353_vm2, %v346_v14 }
 0x1d2   : > { %800 = vmatpush3.bf16.xpose.msra.mxu1 %v456_v24  ;;  %801 = vmatprep.mubr.msk.bf16.mxu1 %vm1184_vm0, %v1183_v0 }
 0x1d5   : > { %796 = vmatmul.mubr.msk.bf16.vlgmr.msra.gmra.mrb[4].mxu0 %vm353_vm2, %v347_v17 }
 0x1d6   : > { %806 = vmatpush3.bf16.xpose.msra.mxu0 %v505_v26  ;;  %807 = vmatprep.mubr.msk.bf16.mxu0 %vm1184_vm0, %v1183_v0 }
 0x1d9   : > { %802 = vmatmul.mubr.msk.bf16.vlgmr.msra.gmra.mrb[4].mxu1 %vm353_vm2, %v348_v16 }
 0x1dd   : > { %808 = vmatmul.mubr.msk.bf16.vlgmr.msra.gmra.mrb[8].mxu0 %vm353_vm2, %v349_v18 }
 0x2a4   : > { %v394_v27 = vpop.f32.mrb[0].mxu1 }
 0x2a5   : > { %v547_v28 = vmul.f32 0.25, %v394_v27  ;;  %v791_v29 = vpop.f32.mrb[1].mxu1 }
 0x2a6   : > { %v397_v30 = vpop.f32.mrb[2].mxu1 }
 0x2a7   : > { %v792_v31 = vpop.f32.mrb[3].mxu1  ;;  %v552_v32 = vsel %vm551_vm3, %v547_v28, -inf }
 0x2a8   : > { %553 = vmax.xlane.f32.xlu0 %v552_v32  ;;  %v443_v33 = vpop.f32.mrb[4].mxu0 }
 0x2a9   : > { %v548_v34 = vmul.f32 0.25, %v443_v33  ;;  %v797_v35 = vpop.f32.mrb[5].mxu0 }
 0x2aa   : > { %v446_v36 = vpop.f32.mrb[6].mxu0 }
 0x2ab   : > { %v798_v37 = vpop.f32.mrb[7].mxu0  ;;  %v555_v38 = vsel %vm551_vm3, %v548_v34, -inf }
 0x2ac   : > { %v492_v39 = vpop.f32.mrb[4].mxu1  ;;  %556 = vmax.xlane.f32.xlu1 %v555_v38 }
 0x2ad   : > { %v549_v40 = vmul.f32 0.25, %v492_v39  ;;  %v803_v41 = vpop.f32.mrb[5].mxu1 }
 0x2ae   : > { %v495_v42 = vpop.f32.mrb[6].mxu1 }
 0x2af   : > { %v804_v43 = vpop.f32.mrb[7].mxu1  ;;  %v558_v44 = vsel %vm551_vm3, %v549_v40, -inf }
 0x2b0   : > { %559 = vmax.xlane.f32.xlu0 %v558_v44  ;;  %v541_v45 = vpop.f32.mrb[8].mxu0 }
 0x2b1   : > { %v550_v46 = vmul.f32 0.25, %v541_v45  ;;  %v809_v47 = vpop.f32.mrb[9].mxu0 }
 0x2b2   : > { %v544_v48 = vpop.f32.mrb[10].mxu0 }
 0x2b3   : > { %v810_v49 = vpop.f32.mrb[11].mxu0  ;;  %v561_v50 = vsel %vm551_vm3, %v550_v46, -inf }
 0x2b4   : > { %562 = vmax.xlane.f32.xlu0 %v561_v50 }
 0x335   : > { %v554_v51 = vpop.xlane.xlu0 %553 }
 0x336   : > { %v564_v52 = vsub.f32 %v547_v28, %v554_v51 }
 0x338   : > { %v568_v53 = vmul.f32 1.442695, %v564_v52 }
 0x339   : > { %v557_v54 = vpop.xlane.xlu1 %556 }
 0x33a   : > { %951 = vpow2.f32 %v568_v53  ;;  %v565_v55 = vsub.f32 %v548_v34, %v557_v54 }
 0x33c   : > { %v570_v56 = vmul.f32 1.442695, %v565_v55 }
 0x33d   : > { %v560_v57 = vpop.xlane.xlu0 %559 }
 0x33e   : > { %953 = vpow2.f32 %v570_v56  ;;  %v566_v58 = vsub.f32 %v549_v40, %v560_v57 }
 0x340   : > { %v572_v59 = vmul.f32 1.442695, %v566_v58 }
 0x341   : > { %v563_v60 = vpop.xlane.xlu0 %562 }
 0x342   : > { %955 = vpow2.f32 %v572_v59  ;;  %v567_v61 = vsub.f32 %v550_v46, %v563_v60 }
 0x344   : > { %v952_v62 = vpop.eup %951  ;;  %v574_v63 = vmul.f32 1.442695, %v567_v61 }
 0x345   : > { %v576_v0 = vsel %vm551_vm3, %v952_v62, 0.0 }
 0x346   : > { %957 = vpow2.f32 %v574_v63  ;;  %577 = vadd.xlane.f32.xlu1 %v576_v0 }
 0x348   : > { %v954_v1 = vpop.eup %953 }
 0x349   : > { %v579_v2 = vsel %vm551_vm3, %v954_v1, 0.0 }
 0x34a   : > { %580 = vadd.xlane.f32.xlu0 %v579_v2 }
 0x34c   : > { %v956_v3 = vpop.eup %955 }
 0x34d   : > { %v582_v4 = vsel %vm551_vm3, %v956_v3, 0.0 }
 0x34e   : > { %583 = vadd.xlane.f32.xlu1 %v582_v4 }
 0x350   : > { %v958_v5 = vpop.eup %957 }
 0x351   : > { %v585_v6 = vsel %vm551_vm3, %v958_v5, 0.0 }
 0x352   : > { %586 = vadd.xlane.f32.xlu0 %v585_v6 }
 0x3d3   : > { %v578_v7 = vpop.xlane.xlu1 %577 }
 0x3d4   : > { %v588_v8 = vmul.f32 4.0, %v578_v7 }
 0x3d6   : > { %959 = vrcp.f32 %v588_v8 }
 0x3d7   : > { %v581_v9 = vpop.xlane.xlu0 %580 }
 0x3d8   : > { %v589_v10 = vmul.f32 4.0, %v581_v9 }
 0x3da   : > { %961 = vrcp.f32 %v589_v10 }
 0x3db   : > { %v584_v11 = vpop.xlane.xlu1 %583 }
 0x3dc   : > { %v590_v12 = vmul.f32 4.0, %v584_v11 }
 0x3de   : > { %963 = vrcp.f32 %v590_v12 }
 0x3df   : > { %v587_v13 = vpop.xlane.xlu0 %586 }
 0x3e0   : > { %v591_v14 = vmul.f32 4.0, %v587_v13  ;;  %v960_v15 = vpop.eup %959 }
 0x3e1   : > { %v596_v18 = vmul.f32 %v960_v15, %v952_v62 }
 0x3e2   : > { %965 = vrcp.f32 %v591_v14 }
 0x3e3   : > { %v600_v22 = vsel %vm551_vm3, %v596_v18, 0.0 }
 0x3e4   : > { %v962_v16 = vpop.eup %961 }
 0x3e5   : > { %v597_v17 = vmul.f32 %v962_v16, %v954_v1 }
 0x3e7   : > { %v601_v20 = vsel %vm551_vm3, %v597_v17, 0.0 }
 0x3e8   : > { %v964_v19 = vpop.eup %963  ;;  %v602_v25 = vadd.f32 %v601_v20, %v600_v22 }
 0x3e9   : > { %v598_v21 = vmul.f32 %v964_v19, %v956_v3 }
 0x3eb   : > { %v603_v23 = vsel %vm551_vm3, %v598_v21, 0.0 }
 0x3ec   : > { %v966_v24 = vpop.eup %965  ;;  %v604_v27 = vadd.f32 %v603_v23, %v602_v25 }
 0x3ed   : > { %v599_v26 = vmul.f32 %v966_v24, %v958_v5 }
 0x3ef   : > { %v605_v28 = vsel %vm551_vm3, %v599_v26, 0.0 }
 0x3f0   : > { %v606_v29 = vadd.f32 %v605_v28, %v604_v27 }
 0x3f2   : > { %607 = vst.msk [vmem:[%s253_s3] sm:$0xf] %vm551_vm3, %v606_v29 }
 0x3f3   : > { %1040 = shalt.err (!%p1037_p0)
}
 0x3f4   : > { %s1041_s11 = scalar_lea.hbm %s1504_s1, 64  ;;  %s1045_s29 = scalar_lea.hbm %s1625_s9, 256 }
 0x3f5   : > { %p1042_p1 = scmp.ne.s32.totalorder %s1504_s1, %s1041_s11  ;;  %p1046_p10 = scmp.lt.u32.totalorder %s1504_s1, %s1625_s9 }
 0x3f6   : > { %p1047_p13 = scmp.lt.u32.totalorder %s1045_s29, %s1041_s11  ;;  %p1049_p6 = scmp.lt.u32.totalorder %s1041_s11, %s1504_s1 }
 0x3f7   : > { %p1043_p5 = pnand %p1042_p1, %p1626_p4 }
 0x3f8   : > { %p1048_p9 = por %p1047_p13, %p1046_p10 }
 0x3f9   : > { %p1044_p7 = pneg %p1043_p5 }
 0x3fa   : > { %p1050_p12 = por %p1049_p6, %p1048_p9 }
 0x3fc   : > { %p1051_p3 = pnand %p1050_p12, %p1044_p7 }
 0x3fe   : > { %1054 = shalt.err (!%p1051_p3)
}
 0x3ff   : > { %815 = dma.vmem_to_hbm [thread:$0]  (%p1626_p4), %s1506_s10, 64, %s1504_s1, %s609_s21  }
 0x400 PF: > { %p829_p2 = scmp.ge.s32.totalorder %s1177_s25, 2  ;;  %s636_s22 = sand.u32 1, %s1125_s12  }
 0x401   : > { %p1627_p11 = scmp.ne.s32.totalorder %s1616_s28, 0  ;;  %s637_s18 = scalar_lea.sflag [#allocation4], %s636_s22 }
 0x403   : > { %p825_p8 = pnand %p829_p2, %p1627_p11 }
 0x405   : > { %1120 = dma.done.wait (!%p825_p8), %s637_s18, 64  }
 0x406   : > { %1122 = vsyncadd (!%p825_p8), %s637_s18, 4294967232  ;;  %s22_s25 = sadd.s32 1, %s1177_s25   ;;  %s1629_s21 = sld [smem:[#allocation11_spill]] }
 0x407   : > { %p1535_p0 = scmp.ge.s32.totalorder %s22_s25, 6   ;;  %s1630_s22 = sld [smem:[#allocation12_spill]] }
 0x408   : > { %s1631_s7 = sld [smem:[#allocation13_spill]]  ;;  %s1632_s24 = sld [smem:[#allocation14_spill]] }
 0x409   : > { %s1634_s12 = smov %s1129_s13  ;;  %s1635_s13 = smov %s1133_s14 }
 0x40a   : > { %s1636_s14 = smov %s1399_s5  ;;  %s1637_s15 = smov %s1141_s16 }
 0x40b   : > { %s1638_s16 = smov %s1145_s17  ;;  %s1639_s17 = smov %s1381_s6 }
 0x40c   : > { %s1640_s18 = smov %s1153_s19  ;;  %s1641_s19 = smov %s1157_s20 }
 0x40d   : > { %s1642_s20 = smov %s1396_s0  ;;  %21 = sbr.rel (!%p1535_p0) target bundleno = 16 (0x10), region = 93 }
 0x40e   : > { %s1643_s23 = smov %s1631_s7 }
 0x414   :  { %642 = vsyncpa [#allocation3], 1 }
 0x415   :  { %644 = vsyncpa [#allocation3 + $0x1], 1 }
 0x416   :  { %645 = vsyncpa [#allocation6], 1 }
 0x417   :  { %647 = vsyncpa [#allocation6 + $0x1], 1 }
 0x418   :  { %648 = vsyncpa [#allocation4], 1 }
 0x419   :  { %650 = vsyncpa [#allocation4 + $0x1], 1 }

</bundles_post_ra>
